<compile_context>
chip_gen: v7x
topology: tpu7x:2x2x1
jax: 0.10.0
libtpu: 0.0.40
codegen_flags: <defaults>
</compile_context>

<pallas_src>
import functools
import math

import jax
import jax.numpy as jnp
import numpy as np
from jax.experimental import pallas as pl
from jax.experimental.pallas import tpu as pltpu


# ------------------------------ Pallas kernel -------------------------------

def _residual_attention_kernel(
    x_ref,        # (1, L, D)      one batch element (f32)
    ln1_g_ref,    # (1, D)         f32
    ln1_b_ref,    # (1, D)         f32
    wqkv_ref,     # (H, D, 3*hd)   bf16 (q-part pre-scaled by 1/sqrt(hd))
    bqkv_ref,     # (H, 1, 3*hd)   f32  (q-part pre-scaled)
    wout_ref,     # (H, hd, D)     bf16
    bout_ref,     # (1, D)         f32
    ln2_g_ref,    # (1, D)         f32
    ln2_b_ref,    # (1, D)         f32
    w1_ref,       # (D, 4D)        bf16
    b1_ref,       # (1, 4D)        f32
    w2_ref,       # (4D, D)        bf16
    b2_ref,       # (1, D)         f32
    o_ref,        # (1, L, D)      output
    *,
    n_head: int,
):
    x = x_ref[0]                       # (L, D)
    L, D = x.shape
    hd = D // n_head
    eps = 1e-5
    cdt = wqkv_ref.dtype               # matmul compute dtype (bf16)

    def layer_norm(v, g, b):
        # LayerNorm subclass computes in float32 (cast back is a no-op for f32 x).
        vf = v.astype(jnp.float32)
        mu = jnp.mean(vf, axis=-1, keepdims=True)
        var = jnp.mean((vf - mu) ** 2, axis=-1, keepdims=True)
        return (vf - mu) * jax.lax.rsqrt(var + eps) * g + b

    # ---- attention branch: x + attn(ln_1(x)) ----
    h1 = layer_norm(x, ln1_g_ref[0], ln1_b_ref[0]).astype(cdt)          # (L, D)
    h1b = jnp.broadcast_to(h1[None, :, :], (n_head, L, D))              # (H, L, D)

    # Fused per-head Q/K/V projection: one batched matmul, output width 3*hd.
    qkv = jnp.einsum('hld,hdk->hlk', h1b, wqkv_ref[...],
                     preferred_element_type=jnp.float32) + bqkv_ref[...]  # (H, L, 3hd)
    q = qkv[..., :hd]                  # (H, L, hd)  (already carries 1/sqrt(hd))
    k = qkv[..., hd:2 * hd]            # (H, L, hd)
    v = qkv[..., 2 * hd:]              # (H, L, hd)

    # Batched attention (f32 accumulation, f32 softmax statistics).
    s = jnp.einsum('hqd,hkd->hqk', q.astype(cdt), k.astype(cdt),
                   preferred_element_type=jnp.float32)                  # (H, L, L)
    s = s - jnp.max(s, axis=-1, keepdims=True)
    p = jnp.exp(s)
    p = p * pl.reciprocal(jnp.sum(p, axis=-1, keepdims=True), approx=True)
    ctx = jnp.einsum('hqk,hkd->hqd', p.astype(cdt), v.astype(cdt),
                     preferred_element_type=jnp.float32)                # (H, L, hd)

    # out_proj(concat_h ctx_h) == sum_h ctx_h @ Wout_h  (no concatenate needed).
    attn_h = jnp.einsum('hld,hdk->hlk', ctx.astype(cdt), wout_ref[...],
                        preferred_element_type=jnp.float32)             # (H, L, D)
    attn = jnp.sum(attn_h, axis=0) + bout_ref[0]                        # (L, D)

    x1 = x.astype(jnp.float32) + attn                                   # residual 1

    # ---- MLP branch: x1 + mlp(ln_2(x1)) ----
    h2 = layer_norm(x1, ln2_g_ref[0], ln2_b_ref[0]).astype(cdt)         # (L, D)
    m = jnp.dot(h2, w1_ref[...], preferred_element_type=jnp.float32) + b1_ref[0]
    # exact (erf-based) GELU, matching nn.GELU() default
    m = 0.5 * m * (1.0 + jax.lax.erf(m * 0.7071067811865476))
    m = jnp.dot(m.astype(cdt), w2_ref[...],
                preferred_element_type=jnp.float32) + b2_ref[0]

    o_ref[0] = (x1 + m).astype(o_ref.dtype)


# --------------------------- parameter preparation ----------------------------

def prepare_params(raw_params, n_head, compute_dtype=jnp.bfloat16):
    """One-time conversion of PyTorch-convention weights into kernel layout.

    raw_params (PyTorch shapes):
      ln1_g (D,), ln1_b (D,), in_proj_w (3D, D), in_proj_b (3D,),
      out_proj_w (D, D), out_proj_b (D,), ln2_g (D,), ln2_b (D,),
      fc1_w (4D, D), fc1_b (4D,), fc2_w (D, 4D), fc2_b (D,)
    """
    (ln1_g, ln1_b, in_w, in_b, out_w, out_b,
     ln2_g, ln2_b, fc1_w, fc1_b, fc2_w, fc2_b) = raw_params
    D = ln1_g.shape[-1]
    hd = D // n_head
    scale = 1.0 / math.sqrt(hd)
    f32 = jnp.float32

    def split_heads(w):   # torch (out, in) (D, D) -> (H, D_in, hd)
        return jnp.transpose(jnp.reshape(w, (n_head, hd, D)), (0, 2, 1))

    wq = split_heads(in_w[:D]) * scale                 # fold 1/sqrt(hd) into q
    wk = split_heads(in_w[D:2 * D])
    wv = split_heads(in_w[2 * D:])
    wqkv = jnp.concatenate([wq, wk, wv], axis=-1).astype(compute_dtype)   # (H, D, 3hd)

    bq = jnp.reshape(in_b[:D] * scale, (n_head, 1, hd))
    bk = jnp.reshape(in_b[D:2 * D], (n_head, 1, hd))
    bv = jnp.reshape(in_b[2 * D:], (n_head, 1, hd))
    bqkv = jnp.concatenate([bq, bk, bv], axis=-1).astype(f32)             # (H, 1, 3hd)

    wout = jnp.reshape(jnp.transpose(out_w), (n_head, hd, D))             # (H, hd, D)

    return (
        jnp.reshape(ln1_g, (1, D)).astype(f32),
        jnp.reshape(ln1_b, (1, D)).astype(f32),
        wqkv, bqkv,
        wout.astype(compute_dtype),
        jnp.reshape(out_b, (1, D)).astype(f32),
        jnp.reshape(ln2_g, (1, D)).astype(f32),
        jnp.reshape(ln2_b, (1, D)).astype(f32),
        jnp.transpose(fc1_w).astype(compute_dtype),                       # (D, 4D)
        jnp.reshape(fc1_b, (1, 4 * D)).astype(f32),
        jnp.transpose(fc2_w).astype(compute_dtype),                       # (4D, D)
        jnp.reshape(fc2_b, (1, D)).astype(f32),
    )


# ------------------------------ wrapper --------------------------------------

def residual_attention_block(x, params, n_head, batch_first=False):
    """x: (L, N, D) if batch_first=False (PyTorch layout), else (N, L, D).

    Prefer batch_first=True in real pipelines to avoid the boundary transposes
    (each is an extra HBM pass over the activations).
    """
    if not batch_first:
        x = jnp.transpose(x, (1, 0, 2))     # (L, N, D) -> (N, L, D)
    N, L, D = x.shape

    (ln1_g, ln1_b, wqkv, bqkv, wout, bout,
     ln2_g, ln2_b, w1, b1, w2, b2) = params
    H = wqkv.shape[0]
    hd = wqkv.shape[-1] // 3
    assert H == n_head and H * hd == D

    def full(shape):
        return pl.BlockSpec(shape, lambda b: (0,) * len(shape))

    in_specs = [
        pl.BlockSpec((1, L, D), lambda b: (b, 0, 0)),   # x
        full((1, D)), full((1, D)),                     # ln1 gamma/beta
        full((H, D, 3 * hd)), full((H, 1, 3 * hd)),     # fused q/k/v weight & bias
        full((H, hd, D)), full((1, D)),                 # out proj weight/bias
        full((1, D)), full((1, D)),                     # ln2 gamma/beta
        full((D, 4 * D)), full((1, 4 * D)),             # mlp fc1
        full((4 * D, D)), full((1, D)),                 # mlp fc2
    ]

    # Explicit scoped-VMEM budget: (possibly double-buffered) params + activation
    # blocks + headroom for in-kernel temporaries (scores, qkv, broadcasts).
    param_bytes = sum(int(p.nbytes) for p in params)
    block_bytes = int(L * D * x.dtype.itemsize)
    vmem_limit = int(min(64 * 1024 * 1024,
                         2 * param_bytes + 4 * block_bytes + (16 << 20)))

    # Advisory cost estimate so XLA can overlap surrounding ops with this call.
    flops = N * (6 * L * D * D          # q/k/v projections
                 + 4 * L * L * D        # scores + attn*V
                 + 2 * L * D * D        # output projection
                 + 16 * L * D * D)      # MLP fc1 + fc2
    transcendentals = N * (H * L * L + 4 * L * D + H * L + 2 * L)   # exp, erf, recip, rsqrt
    bytes_accessed = 2 * int(x.nbytes) + param_bytes

    out = pl.pallas_call(
        functools.partial(_residual_attention_kernel, n_head=n_head),
        out_shape=jax.ShapeDtypeStruct((N, L, D), x.dtype),
        grid_spec=pltpu.PrefetchScalarGridSpec(
            num_scalar_prefetch=0,
            grid=(N,),
            in_specs=in_specs,
            out_specs=pl.BlockSpec((1, L, D), lambda b: (b, 0, 0)),
        ),
        compiler_params=pltpu.CompilerParams(
            dimension_semantics=("parallel",),
            vmem_limit_bytes=vmem_limit),
        cost_estimate=pl.CostEstimate(flops=flops,
                                      transcendentals=transcendentals,
                                      bytes_accessed=bytes_accessed),
    )(x, ln1_g, ln1_b, wqkv, bqkv, wout, bout,
      ln2_g, ln2_b, w1, b1, w2, b2)

    if not batch_first:
        out = jnp.transpose(out, (1, 0, 2))
    return out


# --------------------------- pure-JAX reference -------------------------------

def _reference(x_lnd, raw_params, n_head):
    (ln1_g, ln1_b, in_w, in_b, out_w, out_b,
     ln2_g, ln2_b, fc1_w, fc1_b, fc2_w, fc2_b) = raw_params
    L, N, D = x_lnd.shape
    hd = D // n_head
    eps = 1e-5

    def ln(v, g, b):
        mu = jnp.mean(v, axis=-1, keepdims=True)
        var = jnp.mean((v - mu) ** 2, axis=-1, keepdims=True)
        return (v - mu) / jnp.sqrt(var + eps) * g + b

    x = jnp.transpose(x_lnd, (1, 0, 2))                       # (N, L, D)
    h1 = ln(x, ln1_g, ln1_b)
    qkv = h1 @ in_w.T + in_b
    q, k, v = qkv[..., :D], qkv[..., D:2 * D], qkv[..., 2 * D:]
    q = q.reshape(N, L, n_head, hd).transpose(0, 2, 1, 3) / math.sqrt(hd)
    k = k.reshape(N, L, n_head, hd).transpose(0, 2, 1, 3)
    v = v.reshape(N, L, n_head, hd).transpose(0, 2, 1, 3)
    s = jnp.einsum("nhqd,nhkd->nhqk", q, k)
    p = jax.nn.softmax(s, axis=-1)
    a = jnp.einsum("nhqk,nhkd->nhqd", p, v).transpose(0, 2, 1, 3).reshape(N, L, D)
    a = a @ out_w.T + out_b
    x1 = x + a
    h2 = ln(x1, ln2_g, ln2_b)
    m = h2 @ fc1_w.T + fc1_b
    m = 0.5 * m * (1.0 + jax.lax.erf(m * 0.7071067811865476))
    m = m @ fc2_w.T + fc2_b
    return jnp.transpose(x1 + m, (1, 0, 2))


# --------------------------------- main ---------------------------------------

if __name__ == "__main__":
    # Small but representative: hd=64 matches production CLIP head width so the
    # in-kernel lane slices exercise the same (64-offset) pattern.
    L, N, D, H = 8, 2, 128, 2          # seq, batch, d_model, n_head
    key = jax.random.PRNGKey(0)
    ks = jax.random.split(key, 10)

    x = jax.random.normal(ks[0], (L, N, D), dtype=jnp.float32)

    # deterministic synthetic parameters in PyTorch layout
    in_w = 0.02 * jax.random.normal(ks[1], (3 * D, D), jnp.float32)    # in_proj_weight
    in_b = 0.01 * jax.random.normal(ks[2], (3 * D,), jnp.float32)
    out_w = 0.02 * jax.random.normal(ks[3], (D, D), jnp.float32)       # out_proj.weight
    out_b = 0.01 * jax.random.normal(ks[4], (D,), jnp.float32)
    ln1_g = jnp.ones((D,), jnp.float32); ln1_b = jnp.zeros((D,), jnp.float32)
    ln2_g = jnp.ones((D,), jnp.float32); ln2_b = jnp.zeros((D,), jnp.float32)
    fc1_w = 0.02 * jax.random.normal(ks[5], (4 * D, D), jnp.float32)   # c_fc.weight
    fc1_b = 0.01 * jax.random.normal(ks[6], (4 * D,), jnp.float32)
    fc2_w = 0.02 * jax.random.normal(ks[7], (D, 4 * D), jnp.float32)   # c_proj.weight
    fc2_b = 0.01 * jax.random.normal(ks[8], (D,), jnp.float32)

    raw_params = (ln1_g, ln1_b, in_w, in_b, out_w, out_b,
                  ln2_g, ln2_b, fc1_w, fc1_b, fc2_w, fc2_b)

    params = prepare_params(raw_params, H)    # one-time weight prep (bf16, head-split, fused qkv)
    out = jax.block_until_ready(residual_attention_block(x, params, H))
    ref = jax.block_until_ready(_reference(x, raw_params, H))

    # bf16 matmul operands with f32 accumulation -> loosened tolerance vs f32 reference.
    np.testing.assert_allclose(np.asarray(out), np.asarray(ref), rtol=2e-2, atol=2e-2)

    print("KERNEL_OK")
</pallas_src>

<mosaic_0001>
module attributes {stable_mosaic.version = 11 : i64} {
  func.func @_residual_attention_kernel(%arg0: i32, %arg1: memref<1x8x128xf32, #tpu.memory_space<vmem>>, %arg2: memref<1x128xf32, #tpu.memory_space<vmem>>, %arg3: memref<1x128xf32, #tpu.memory_space<vmem>>, %arg4: memref<2x128x192xbf16, #tpu.memory_space<vmem>>, %arg5: memref<2x1x192xf32, #tpu.memory_space<vmem>>, %arg6: memref<2x64x128xbf16, #tpu.memory_space<vmem>>, %arg7: memref<1x128xf32, #tpu.memory_space<vmem>>, %arg8: memref<1x128xf32, #tpu.memory_space<vmem>>, %arg9: memref<1x128xf32, #tpu.memory_space<vmem>>, %arg10: memref<128x512xbf16, #tpu.memory_space<vmem>>, %arg11: memref<1x512xf32, #tpu.memory_space<vmem>>, %arg12: memref<512x128xbf16, #tpu.memory_space<vmem>>, %arg13: memref<1x128xf32, #tpu.memory_space<vmem>>, %arg14: memref<1x8x128xf32, #tpu.memory_space<vmem>>) attributes {dimension_semantics = [#tpu.dimension_semantics<parallel>], iteration_bounds = array<i64: 2>, scalar_prefetch = 0 : i64, scratch_operands = 0 : i64, tpu.core_type = #tpu.core_type<tc>, window_params = [{transform_indices = @transform_0, window_bounds = array<i64: 1, 8, 128>}, {pipeline_mode = #tpu.pipeline_mode<synchronous>, transform_indices = @transform_1, window_bounds = array<i64: 1, 128>}, {pipeline_mode = #tpu.pipeline_mode<synchronous>, transform_indices = @transform_2, window_bounds = array<i64: 1, 128>}, {pipeline_mode = #tpu.pipeline_mode<synchronous>, transform_indices = @transform_3, window_bounds = array<i64: 2, 128, 192>}, {pipeline_mode = #tpu.pipeline_mode<synchronous>, transform_indices = @transform_4, window_bounds = array<i64: 2, 1, 192>}, {pipeline_mode = #tpu.pipeline_mode<synchronous>, transform_indices = @transform_5, window_bounds = array<i64: 2, 64, 128>}, {pipeline_mode = #tpu.pipeline_mode<synchronous>, transform_indices = @transform_6, window_bounds = array<i64: 1, 128>}, {pipeline_mode = #tpu.pipeline_mode<synchronous>, transform_indices = @transform_7, window_bounds = array<i64: 1, 128>}, {pipeline_mode = #tpu.pipeline_mode<synchronous>, transform_indices = @transform_8, window_bounds = array<i64: 1, 128>}, {pipeline_mode = #tpu.pipeline_mode<synchronous>, transform_indices = @transform_9, window_bounds = array<i64: 128, 512>}, {pipeline_mode = #tpu.pipeline_mode<synchronous>, transform_indices = @transform_10, window_bounds = array<i64: 1, 512>}, {pipeline_mode = #tpu.pipeline_mode<synchronous>, transform_indices = @transform_11, window_bounds = array<i64: 512, 128>}, {pipeline_mode = #tpu.pipeline_mode<synchronous>, transform_indices = @transform_12, window_bounds = array<i64: 1, 128>}, {transform_indices = @transform_13, window_bounds = array<i64: 1, 8, 128>}]} {
    %c0 = arith.constant 0 : index
    %c0_0 = arith.constant 0 : index
    %c0_1 = arith.constant 0 : index
    %0 = vector.load %arg1[%c0, %c0_0, %c0_1] : memref<1x8x128xf32, #tpu.memory_space<vmem>>, vector<1x8x128xf32>
    %1 = vector.shape_cast %0 : vector<1x8x128xf32> to vector<8x128xf32>
    %c0_2 = arith.constant 0 : index
    %c0_3 = arith.constant 0 : index
    %2 = vector.load %arg2[%c0_2, %c0_3] : memref<1x128xf32, #tpu.memory_space<vmem>>, vector<1x128xf32>
    %3 = vector.shape_cast %2 : vector<1x128xf32> to vector<128xf32>
    %c0_4 = arith.constant 0 : index
    %c0_5 = arith.constant 0 : index
    %4 = vector.load %arg3[%c0_4, %c0_5] : memref<1x128xf32, #tpu.memory_space<vmem>>, vector<1x128xf32>
    %5 = vector.shape_cast %4 : vector<1x128xf32> to vector<128xf32>
    %cst = arith.constant dense<0.000000e+00> : vector<8xf32>
    %6 = vector.multi_reduction <add>, %1, %cst [1] : vector<8x128xf32> to vector<8xf32>
    %7 = vector.shape_cast %6 : vector<8xf32> to vector<8x1xf32>
    %cst_6 = arith.constant 1.280000e+02 : f32
    %8 = vector.broadcast %cst_6 : f32 to vector<8x1xf32>
    %9 = arith.divf %7, %8 : vector<8x1xf32>
    %10 = vector.broadcast %9 : vector<8x1xf32> to vector<8x128xf32>
    %11 = arith.subf %1, %10 : vector<8x128xf32>
    %12 = arith.mulf %11, %11 : vector<8x128xf32>
    %cst_7 = arith.constant dense<0.000000e+00> : vector<8xf32>
    %13 = vector.multi_reduction <add>, %12, %cst_7 [1] : vector<8x128xf32> to vector<8xf32>
    %14 = vector.shape_cast %13 : vector<8xf32> to vector<8x1xf32>
    %cst_8 = arith.constant 1.280000e+02 : f32
    %15 = vector.broadcast %cst_8 : f32 to vector<8x1xf32>
    %16 = arith.divf %14, %15 : vector<8x1xf32>
    %17 = vector.broadcast %9 : vector<8x1xf32> to vector<8x128xf32>
    %18 = arith.subf %1, %17 : vector<8x128xf32>
    %cst_9 = arith.constant 9.99999974E-6 : f32
    %19 = vector.broadcast %cst_9 : f32 to vector<8x1xf32>
    %20 = arith.addf %16, %19 : vector<8x1xf32>
    %21 = math.rsqrt %20 : vector<8x1xf32>
    %22 = vector.broadcast %21 : vector<8x1xf32> to vector<8x128xf32>
    %23 = arith.mulf %18, %22 : vector<8x128xf32>
    %24 = vector.shape_cast %3 : vector<128xf32> to vector<1x128xf32>
    %25 = vector.broadcast %24 : vector<1x128xf32> to vector<8x128xf32>
    %26 = arith.mulf %23, %25 : vector<8x128xf32>
    %27 = vector.shape_cast %5 : vector<128xf32> to vector<1x128xf32>
    %28 = vector.broadcast %27 : vector<1x128xf32> to vector<8x128xf32>
    %29 = arith.addf %26, %28 : vector<8x128xf32>
    %30 = arith.truncf %29 : vector<8x128xf32> to vector<8x128xbf16>
    %31 = vector.shape_cast %30 : vector<8x128xbf16> to vector<1x8x128xbf16>
    %32 = vector.shape_cast %31 : vector<1x8x128xbf16> to vector<1x8x128xbf16>
    %33 = vector.broadcast %32 : vector<1x8x128xbf16> to vector<2x8x128xbf16>
    %c0_10 = arith.constant 0 : index
    %c0_11 = arith.constant 0 : index
    %c0_12 = arith.constant 0 : index
    %34 = vector.load %arg4[%c0_10, %c0_11, %c0_12] : memref<2x128x192xbf16, #tpu.memory_space<vmem>>, vector<2x128x192xbf16>
    "tpu.trace_start"() <{level = 10 : i32, message = "hld,hdk->hlk"}> : () -> ()
    %cst_13 = arith.constant dense<0.000000e+00> : vector<2x8x192xf32>
    %35 = tpu.matmul %33, %34, %cst_13 {dimension_numbers = #tpu.dot_dimension_numbers<[2], [1], [1], [2], [0, 0, 0, 1, 1, 2], [0], [0]>} : vector<2x8x128xbf16>, vector<2x128x192xbf16>, vector<2x8x192xf32> -> vector<2x8x192xf32>
    "tpu.trace_stop"() : () -> ()
    %c0_14 = arith.constant 0 : index
    %c0_15 = arith.constant 0 : index
    %c0_16 = arith.constant 0 : index
    %36 = vector.load %arg5[%c0_14, %c0_15, %c0_16] : memref<2x1x192xf32, #tpu.memory_space<vmem>>, vector<2x1x192xf32>
    %37 = vector.broadcast %36 : vector<2x1x192xf32> to vector<2x8x192xf32>
    %38 = arith.addf %35, %37 : vector<2x8x192xf32>
    %39 = vector.extract_strided_slice %38 {offsets = [0, 0, 0], sizes = [2, 8, 64], strides = [1, 1, 1]} : vector<2x8x192xf32> to vector<2x8x64xf32>
    %40 = vector.extract_strided_slice %38 {offsets = [0, 0, 64], sizes = [2, 8, 64], strides = [1, 1, 1]} : vector<2x8x192xf32> to vector<2x8x64xf32>
    %41 = vector.extract_strided_slice %38 {offsets = [0, 0, 128], sizes = [2, 8, 64], strides = [1, 1, 1]} : vector<2x8x192xf32> to vector<2x8x64xf32>
    %42 = arith.truncf %39 : vector<2x8x64xf32> to vector<2x8x64xbf16>
    %43 = arith.truncf %40 : vector<2x8x64xf32> to vector<2x8x64xbf16>
    "tpu.trace_start"() <{level = 10 : i32, message = "hqd,hkd->hqk"}> : () -> ()
    %cst_17 = arith.constant dense<0.000000e+00> : vector<2x8x8xf32>
    %44 = tpu.matmul %42, %43, %cst_17 {dimension_numbers = #tpu.dot_dimension_numbers<[2], [2], [1], [1], [0, 0, 0, 1, 1, 1], [0], [0]>} : vector<2x8x64xbf16>, vector<2x8x64xbf16>, vector<2x8x8xf32> -> vector<2x8x8xf32>
    "tpu.trace_stop"() : () -> ()
    %cst_18 = arith.constant dense<0xFF800000> : vector<2x8xf32>
    %45 = vector.multi_reduction <maximumf>, %44, %cst_18 [2] : vector<2x8x8xf32> to vector<2x8xf32>
    %46 = vector.shape_cast %45 : vector<2x8xf32> to vector<2x8x1xf32>
    %47 = vector.broadcast %46 : vector<2x8x1xf32> to vector<2x8x8xf32>
    %48 = arith.subf %44, %47 : vector<2x8x8xf32>
    %49 = math.exp %48 : vector<2x8x8xf32>
    %cst_19 = arith.constant dense<0.000000e+00> : vector<2x8xf32>
    %50 = vector.multi_reduction <add>, %49, %cst_19 [2] : vector<2x8x8xf32> to vector<2x8xf32>
    %51 = vector.shape_cast %50 : vector<2x8xf32> to vector<2x8x1xf32>
    %52 = tpu.reciprocal %51 {approx = true} : vector<2x8x1xf32> -> vector<2x8x1xf32>
    %53 = vector.broadcast %52 : vector<2x8x1xf32> to vector<2x8x8xf32>
    %54 = arith.mulf %49, %53 : vector<2x8x8xf32>
    %55 = arith.truncf %54 : vector<2x8x8xf32> to vector<2x8x8xbf16>
    %56 = arith.truncf %41 : vector<2x8x64xf32> to vector<2x8x64xbf16>
    "tpu.trace_start"() <{level = 10 : i32, message = "hqk,hkd->hqd"}> : () -> ()
    %cst_20 = arith.constant dense<0.000000e+00> : vector<2x8x64xf32>
    %57 = tpu.matmul %55, %56, %cst_20 {dimension_numbers = #tpu.dot_dimension_numbers<[2], [1], [1], [2], [0, 0, 0, 1, 1, 2], [0], [0]>} : vector<2x8x8xbf16>, vector<2x8x64xbf16>, vector<2x8x64xf32> -> vector<2x8x64xf32>
    "tpu.trace_stop"() : () -> ()
    %58 = arith.truncf %57 : vector<2x8x64xf32> to vector<2x8x64xbf16>
    %c0_21 = arith.constant 0 : index
    %c0_22 = arith.constant 0 : index
    %c0_23 = arith.constant 0 : index
    %59 = vector.load %arg6[%c0_21, %c0_22, %c0_23] : memref<2x64x128xbf16, #tpu.memory_space<vmem>>, vector<2x64x128xbf16>
    "tpu.trace_start"() <{level = 10 : i32, message = "hld,hdk->hlk"}> : () -> ()
    %cst_24 = arith.constant dense<0.000000e+00> : vector<2x8x128xf32>
    %60 = tpu.matmul %58, %59, %cst_24 {dimension_numbers = #tpu.dot_dimension_numbers<[2], [1], [1], [2], [0, 0, 0, 1, 1, 2], [0], [0]>} : vector<2x8x64xbf16>, vector<2x64x128xbf16>, vector<2x8x128xf32> -> vector<2x8x128xf32>
    "tpu.trace_stop"() : () -> ()
    %cst_25 = arith.constant dense<0.000000e+00> : vector<8x128xf32>
    %61 = vector.multi_reduction <add>, %60, %cst_25 [0] : vector<2x8x128xf32> to vector<8x128xf32>
    %c0_26 = arith.constant 0 : index
    %c0_27 = arith.constant 0 : index
    %62 = vector.load %arg7[%c0_26, %c0_27] : memref<1x128xf32, #tpu.memory_space<vmem>>, vector<1x128xf32>
    %63 = vector.shape_cast %62 : vector<1x128xf32> to vector<128xf32>
    %64 = vector.shape_cast %63 : vector<128xf32> to vector<1x128xf32>
    %65 = vector.broadcast %64 : vector<1x128xf32> to vector<8x128xf32>
    %66 = arith.addf %61, %65 : vector<8x128xf32>
    %67 = arith.addf %1, %66 : vector<8x128xf32>
    %c0_28 = arith.constant 0 : index
    %c0_29 = arith.constant 0 : index
    %68 = vector.load %arg8[%c0_28, %c0_29] : memref<1x128xf32, #tpu.memory_space<vmem>>, vector<1x128xf32>
    %69 = vector.shape_cast %68 : vector<1x128xf32> to vector<128xf32>
    %c0_30 = arith.constant 0 : index
    %c0_31 = arith.constant 0 : index
    %70 = vector.load %arg9[%c0_30, %c0_31] : memref<1x128xf32, #tpu.memory_space<vmem>>, vector<1x128xf32>
    %71 = vector.shape_cast %70 : vector<1x128xf32> to vector<128xf32>
    %cst_32 = arith.constant dense<0.000000e+00> : vector<8xf32>
    %72 = vector.multi_reduction <add>, %67, %cst_32 [1] : vector<8x128xf32> to vector<8xf32>
    %73 = vector.shape_cast %72 : vector<8xf32> to vector<8x1xf32>
    %cst_33 = arith.constant 1.280000e+02 : f32
    %74 = vector.broadcast %cst_33 : f32 to vector<8x1xf32>
    %75 = arith.divf %73, %74 : vector<8x1xf32>
    %76 = vector.broadcast %75 : vector<8x1xf32> to vector<8x128xf32>
    %77 = arith.subf %67, %76 : vector<8x128xf32>
    %78 = arith.mulf %77, %77 : vector<8x128xf32>
    %cst_34 = arith.constant dense<0.000000e+00> : vector<8xf32>
    %79 = vector.multi_reduction <add>, %78, %cst_34 [1] : vector<8x128xf32> to vector<8xf32>
    %80 = vector.shape_cast %79 : vector<8xf32> to vector<8x1xf32>
    %cst_35 = arith.constant 1.280000e+02 : f32
    %81 = vector.broadcast %cst_35 : f32 to vector<8x1xf32>
    %82 = arith.divf %80, %81 : vector<8x1xf32>
    %83 = vector.broadcast %75 : vector<8x1xf32> to vector<8x128xf32>
    %84 = arith.subf %67, %83 : vector<8x128xf32>
    %cst_36 = arith.constant 9.99999974E-6 : f32
    %85 = vector.broadcast %cst_36 : f32 to vector<8x1xf32>
    %86 = arith.addf %82, %85 : vector<8x1xf32>
    %87 = math.rsqrt %86 : vector<8x1xf32>
    %88 = vector.broadcast %87 : vector<8x1xf32> to vector<8x128xf32>
    %89 = arith.mulf %84, %88 : vector<8x128xf32>
    %90 = vector.shape_cast %69 : vector<128xf32> to vector<1x128xf32>
    %91 = vector.broadcast %90 : vector<1x128xf32> to vector<8x128xf32>
    %92 = arith.mulf %89, %91 : vector<8x128xf32>
    %93 = vector.shape_cast %71 : vector<128xf32> to vector<1x128xf32>
    %94 = vector.broadcast %93 : vector<1x128xf32> to vector<8x128xf32>
    %95 = arith.addf %92, %94 : vector<8x128xf32>
    %96 = arith.truncf %95 : vector<8x128xf32> to vector<8x128xbf16>
    %c0_37 = arith.constant 0 : index
    %c0_38 = arith.constant 0 : index
    %97 = vector.load %arg10[%c0_37, %c0_38] : memref<128x512xbf16, #tpu.memory_space<vmem>>, vector<128x512xbf16>
    %cst_39 = arith.constant dense<0.000000e+00> : vector<8x512xf32>
    %98 = tpu.matmul %96, %97, %cst_39 {dimension_numbers = #tpu.dot_dimension_numbers<[1], [0], [0], [1], [0, 0, 1, 1], [], []>} : vector<8x128xbf16>, vector<128x512xbf16>, vector<8x512xf32> -> vector<8x512xf32>
    %c0_40 = arith.constant 0 : index
    %c0_41 = arith.constant 0 : index
    %99 = vector.load %arg11[%c0_40, %c0_41] : memref<1x512xf32, #tpu.memory_space<vmem>>, vector<1x512xf32>
    %100 = vector.shape_cast %99 : vector<1x512xf32> to vector<512xf32>
    %101 = vector.shape_cast %100 : vector<512xf32> to vector<1x512xf32>
    %102 = vector.broadcast %101 : vector<1x512xf32> to vector<8x512xf32>
    %103 = arith.addf %98, %102 : vector<8x512xf32>
    %cst_42 = arith.constant 5.000000e-01 : f32
    %104 = vector.broadcast %cst_42 : f32 to vector<8x512xf32>
    %105 = arith.mulf %104, %103 : vector<8x512xf32>
    %cst_43 = arith.constant 0.707106769 : f32
    %106 = vector.broadcast %cst_43 : f32 to vector<8x512xf32>
    %107 = arith.mulf %103, %106 : vector<8x512xf32>
    %108 = math.erf %107 : vector<8x512xf32>
    %cst_44 = arith.constant 1.000000e+00 : f32
    %109 = vector.broadcast %cst_44 : f32 to vector<8x512xf32>
    %110 = arith.addf %109, %108 : vector<8x512xf32>
    %111 = arith.mulf %105, %110 : vector<8x512xf32>
    %112 = arith.truncf %111 : vector<8x512xf32> to vector<8x512xbf16>
    %c0_45 = arith.constant 0 : index
    %c0_46 = arith.constant 0 : index
    %113 = vector.load %arg12[%c0_45, %c0_46] : memref<512x128xbf16, #tpu.memory_space<vmem>>, vector<512x128xbf16>
    %cst_47 = arith.constant dense<0.000000e+00> : vector<8x128xf32>
    %114 = tpu.matmul %112, %113, %cst_47 {dimension_numbers = #tpu.dot_dimension_numbers<[1], [0], [0], [1], [0, 0, 1, 1], [], []>} : vector<8x512xbf16>, vector<512x128xbf16>, vector<8x128xf32> -> vector<8x128xf32>
    %c0_48 = arith.constant 0 : index
    %c0_49 = arith.constant 0 : index
    %115 = vector.load %arg13[%c0_48, %c0_49] : memref<1x128xf32, #tpu.memory_space<vmem>>, vector<1x128xf32>
    %116 = vector.shape_cast %115 : vector<1x128xf32> to vector<128xf32>
    %117 = vector.shape_cast %116 : vector<128xf32> to vector<1x128xf32>
    %118 = vector.broadcast %117 : vector<1x128xf32> to vector<8x128xf32>
    %119 = arith.addf %114, %118 : vector<8x128xf32>
    %120 = arith.addf %67, %119 : vector<8x128xf32>
    %c0_50 = arith.constant 0 : index
    %c0_51 = arith.constant 0 : index
    %c0_52 = arith.constant 0 : index
    %121 = vector.load %arg14[%c0_50, %c0_51, %c0_52] : memref<1x8x128xf32, #tpu.memory_space<vmem>>, vector<1x8x128xf32>
    %122 = vector.shape_cast %121 : vector<1x8x128xf32> to vector<8x128xf32>
    %123 = vector.shape_cast %120 : vector<8x128xf32> to vector<1x8x128xf32>
    tpu.vector_store %arg14[%c0_50, %c0_51, %c0_52], %123 {strides = array<i32>} : memref<1x8x128xf32, #tpu.memory_space<vmem>>, vector<1x8x128xf32>,
    return
  }
  func.func @transform_0(%arg0: i32) -> (i32, i32, i32) {
    %c0_i32 = arith.constant 0 : i32
    %c0_i32_0 = arith.constant 0 : i32
    %c0_i32_1 = arith.constant 0 : i32
    return %arg0, %c0_i32, %c0_i32_0 : i32, i32, i32
  }
  func.func @transform_1(%arg0: i32) -> (i32, i32) {
    %c0_i32 = arith.constant 0 : i32
    %c0_i32_0 = arith.constant 0 : i32
    %c0_i32_1 = arith.constant 0 : i32
    return %c0_i32, %c0_i32_0 : i32, i32
  }
  func.func @transform_2(%arg0: i32) -> (i32, i32) {
    %c0_i32 = arith.constant 0 : i32
    %c0_i32_0 = arith.constant 0 : i32
    %c0_i32_1 = arith.constant 0 : i32
    return %c0_i32, %c0_i32_0 : i32, i32
  }
  func.func @transform_3(%arg0: i32) -> (i32, i32, i32) {
    %c0_i32 = arith.constant 0 : i32
    %c0_i32_0 = arith.constant 0 : i32
    %c0_i32_1 = arith.constant 0 : i32
    %c0_i32_2 = arith.constant 0 : i32
    return %c0_i32, %c0_i32_0, %c0_i32_1 : i32, i32, i32
  }
  func.func @transform_4(%arg0: i32) -> (i32, i32, i32) {
    %c0_i32 = arith.constant 0 : i32
    %c0_i32_0 = arith.constant 0 : i32
    %c0_i32_1 = arith.constant 0 : i32
    %c0_i32_2 = arith.constant 0 : i32
    return %c0_i32, %c0_i32_0, %c0_i32_1 : i32, i32, i32
  }
  func.func @transform_5(%arg0: i32) -> (i32, i32, i32) {
    %c0_i32 = arith.constant 0 : i32
    %c0_i32_0 = arith.constant 0 : i32
    %c0_i32_1 = arith.constant 0 : i32
    %c0_i32_2 = arith.constant 0 : i32
    return %c0_i32, %c0_i32_0, %c0_i32_1 : i32, i32, i32
  }
  func.func @transform_6(%arg0: i32) -> (i32, i32) {
    %c0_i32 = arith.constant 0 : i32
    %c0_i32_0 = arith.constant 0 : i32
    %c0_i32_1 = arith.constant 0 : i32
    return %c0_i32, %c0_i32_0 : i32, i32
  }
  func.func @transform_7(%arg0: i32) -> (i32, i32) {
    %c0_i32 = arith.constant 0 : i32
    %c0_i32_0 = arith.constant 0 : i32
    %c0_i32_1 = arith.constant 0 : i32
    return %c0_i32, %c0_i32_0 : i32, i32
  }
  func.func @transform_8(%arg0: i32) -> (i32, i32) {
    %c0_i32 = arith.constant 0 : i32
    %c0_i32_0 = arith.constant 0 : i32
    %c0_i32_1 = arith.constant 0 : i32
    return %c0_i32, %c0_i32_0 : i32, i32
  }
  func.func @transform_9(%arg0: i32) -> (i32, i32) {
    %c0_i32 = arith.constant 0 : i32
    %c0_i32_0 = arith.constant 0 : i32
    %c0_i32_1 = arith.constant 0 : i32
    return %c0_i32, %c0_i32_0 : i32, i32
  }
  func.func @transform_10(%arg0: i32) -> (i32, i32) {
    %c0_i32 = arith.constant 0 : i32
    %c0_i32_0 = arith.constant 0 : i32
    %c0_i32_1 = arith.constant 0 : i32
    return %c0_i32, %c0_i32_0 : i32, i32
  }
  func.func @transform_11(%arg0: i32) -> (i32, i32) {
    %c0_i32 = arith.constant 0 : i32
    %c0_i32_0 = arith.constant 0 : i32
    %c0_i32_1 = arith.constant 0 : i32
    return %c0_i32, %c0_i32_0 : i32, i32
  }
  func.func @transform_12(%arg0: i32) -> (i32, i32) {
    %c0_i32 = arith.constant 0 : i32
    %c0_i32_0 = arith.constant 0 : i32
    %c0_i32_1 = arith.constant 0 : i32
    return %c0_i32, %c0_i32_0 : i32, i32
  }
  func.func @transform_13(%arg0: i32) -> (i32, i32, i32) {
    %c0_i32 = arith.constant 0 : i32
    %c0_i32_0 = arith.constant 0 : i32
    %c0_i32_1 = arith.constant 0 : i32
    return %arg0, %c0_i32, %c0_i32_0 : i32, i32, i32
  }
}

</mosaic_0001>

<bundles_post_ra>
// kernel: tpu_custom_call.1
= control target key start
LH: loop header
LB: loop body
LE: loop exit
PB: predicated region body
PF: predicated region fallthrough
CT: control target
= control target key end

     0   :  { %s3009_s0 = inlined_call_operand.vmem [shape: f32[2,8,128], index: 0, kind: input, shape index: {}]   ;;  %s3010_s1 = inlined_call_operand.vmem [shape: f32[1,128], index: 1, kind: input, shape index: {}]   ;;  %s3011_s2 = inlined_call_operand.vmem [shape: f32[1,128], index: 2, kind: input, shape index: {}]   ;;  %s3012_s3 = inlined_call_operand.vmem [shape: bf16[2,128,192], index: 3, kind: input, shape index: {}]   ;;  %s3013_s4 = inlined_call_operand.vmem [shape: f32[2,1,192], index: 4, kind: input, shape index: {}]   ;;  %s3014_s5 = inlined_call_operand.vmem [shape: bf16[2,64,128], index: 5, kind: input, shape index: {}]   ;;  %s3015_s6 = inlined_call_operand.vmem [shape: f32[1,128], index: 6, kind: input, shape index: {}]   ;;  %s3016_s7 = inlined_call_operand.vmem [shape: f32[1,128], index: 7, kind: input, shape index: {}]   ;;  %s3017_s8 = inlined_call_operand.vmem [shape: f32[1,128], index: 8, kind: input, shape index: {}]   ;;  %s3018_s9 = inlined_call_operand.vmem [shape: bf16[128,512], index: 9, kind: input, shape index: {}]   ;;  %s3019_s10 = inlined_call_operand.vmem [shape: f32[1,512], index: 10, kind: input, shape index: {}]   ;;  %s3020_s11 = inlined_call_operand.hbm [shape: bf16[512,128], index: 11, kind: input, shape index: {}]   ;;  %s3021_s12 = inlined_call_operand.vmem [shape: f32[1,128], index: 12, kind: input, shape index: {}]   ;;  %s3022_s13 = inlined_call_operand.hbm [shape: f32[2,8,128], index: 13, kind: output, shape index: {}]  }
   0x1   :  { %3029 = sst [smem:[#allocation11_spill]] %s3020_s11 }
   0x2   :  { %18 = vsyncpa [#allocation3], 0 }
   0x3   :  { %19 = vsyncpa [#allocation4], 0 }
   0x4   :  { %21 = vsyncpa [#allocation4 + $0x1], 0  ;;  %s2565_s25 = smov 0   ;;  %s2567_s26 = smov 0  }
   0x5   :  { %s2569_s27 = smov 0   ;;  %s2571_s28 = smov 0  }
   0x6 LB: > { %3030 = sst [smem:[#allocation8_spill]] %s2481_s27  ;;  %s2586_s29 = sadd.s32 4294967295, %s2485_s28   ;;  %s2485_s28 = sphi %s2571_s28, %s3043_s28   ;;  %s2481_s27 = sphi %s2569_s27, %s3045_s27   ;;  %s2477_s26 = sphi %s2567_s26, %s3047_s26   ;;  %s2473_s25 = sphi %s2565_s25, %s3046_s25  }
   0x7   : > { %s1941_s30 = sadd.s32 4294967294, %s2485_s28   ;;  %s2590_s14 = sadd.s32 1, %s2485_s28  }
   0x8   : > { %3031 = sst [smem:[#allocation9_spill]] %s2590_s14  ;;  %s312_s15 = sadd.s32 1, %s2481_s27 }
   0x9   : > { %s309_s16 = ssub.s32 %s2485_s28, %s2590_s14  ;;  %p322_p0 = scmp.ne.s32.totalorder %s2481_s27, %s2477_s26 }
   0xa   : > { %p310_p1 = scmp.eq.s32.totalorder %s309_s16, 0  ;;  %p323_p2 = scmp.eq.s32.totalorder %s2586_s29, 1 }
   0xb   : > { %p328_p3 = scmp.ne.s32.totalorder %s2477_s26, %s2473_s25  ;;  %p329_p4 = scmp.eq.s32.totalorder %s1941_s30, 1 }
   0xc   : > { %s2601_s17 = scalar_select %p310_p1, %s2481_s27, %s312_s15  }
   0xd   : > { %p2603_p5 = por %p323_p2, %p322_p0  ;;  %p2607_p6 = por %p329_p4, %p328_p3 }
   0xe   : > { %3032 = sst [smem:[#allocation10_spill]] %s2601_s17  ;;  %p1942_p7 = scmp.ge.s32.totalorder %s2485_s28, 1 }
   0xf   : > { %s3033_s18 = scalar_select %p2603_p5, 1, 0 }
  0x10   : > { %s3034_s19 = scalar_select %p2607_p6, 1, 0 }
  0x11   : > { %p336_p8 = scmp.lt.s32.totalorder %s2485_s28, 3  ;;  %p3026_p9 = scmp.eq.s32.totalorder %s2586_s29, 0 }
  0x12   : > { %s2487_s21 = smov [#allocation2]   ;;  %s3037_s11 = sld [smem:[#allocation11_spill]] }
  0x13   : > { %p2614_p10 = pnand %p1942_p7, %p336_p8  ;;  %s378_s22 = sshll.u32 %s2487_s21, 4  ;;  %s379_s22 = int_to_ptr.vmem [resolvable:$true] %s378_s22 }
  0x15   : > { %s3035_s20 = scalar_select %p2614_p10, 1, 0 }
  0x16   : > { %p2185_p11 = pneg %p2614_p10 }
  0x18   : > { %p2622_p12 = pnand %p3026_p9, %p2185_p11  ;;  %s2391_s15 = scalar_lea.hbm %s3037_s11, 4096 }
  0x19   : > { %p2392_p13 = scmp.ne.s32.totalorder %s3037_s11, %s2391_s15  ;;  %p2398_p3 = scmp.lt.u32.totalorder %s2391_s15, %s3037_s11 }
  0x1a   : > { %p2393_p0 = pneg %p2622_p12 }
  0x1c   : > { %p2394_p1 = pnand %p2393_p0, %p2392_p13 }
  0x1e   : > { %p2395_p2 = pneg %p2394_p1 }
  0x20   : > { %p2400_p4 = pnand %p2398_p3, %p2395_p2 }
  0x22   : > { %2403 = shalt.err (!%p2400_p4)
}
  0x23   : > { %s2404_s14 = scalar_lea.vmem %s379_s22, 4096  ;;  %p2412_p9 = scmp.lt.s32.totalorder %s379_s22, %s379_s22 }
  0x24   : > { %p2405_p7 = scmp.ne.s32.totalorder %s379_s22, %s2404_s14  ;;  %p2413_p6 = scmp.lt.s32.totalorder %s2404_s14, %s2404_s14 }
  0x26   : > { %p2407_p8 = pnand %p2405_p7, %p2393_p0  ;;  %p2414_p5 = por %p2413_p6, %p2412_p9 }
  0x28   : > { %p2408_p11 = pneg %p2407_p8 }
  0x2a   : > { %p2415_p10 = pnand %p2414_p5, %p2408_p11 }
  0x2c   : > { %2418 = shalt.err (!%p2415_p10)
}
  0x2d   : > { %s2488_s17 = smov 64   ;;  %s2489_s24 = smov 4  }
  0x2e   : > { %2188 = dma.hbm_to_vmem [thread:$0]  (!%p2622_p12), %s3037_s11, 4096, %s379_s22, [#allocation3], %s2488_s17, %s2488_s17, %s2489_s24  }
  0x2f   : > { %p3038_p13 = scmp.ne.s32.totalorder %s3035_s20, 0 }
  0x30   : > { %p3039_p1 = scmp.eq.s32.totalorder (!%p3038_p13), %s2586_s29, 0 }
  0x31   : > { %404 = sbr.rel (%p3038_p13) target bundleno = 2464 (0x9a0), region = 72 }
  0x38   : > { %2464 = dma.done.wait (%p3039_p1), [#allocation3], 4096   ;;  %p3040_p0 = pmov %p3039_p1 }
  0x39   : > { %p447_p5 = scmp.lt.s32.totalorder %s2586_s29, 1  ;;  %v2235_v1 = vld [vmem:[%s3012_s3 + $0x4] ss:$8 sps:$4 sm:$0xff]   ;;  %v2239_v3 = vld [vmem:[%s3012_s3] ss:$8 sps:$4 sm:$0xff]   ;;  %v2490_v31 = vmov 0   ;;  %v518_v48 = vlaneseq }
  0x3a   : > { %2466 = vsyncadd (%p3040_p0), [#allocation3], 4294963200  ;;  %v2237_v2 = vld [vmem:[%s3012_s3 + $0x84] ss:$8 sps:$4 sm:$0xff]   ;;  %v2240_v4 = vld [vmem:[%s3012_s3 + $0x80] ss:$8 sps:$4 sm:$0xff]   ;;  %618 = vmatprep.subr.bf16.mxu0 %v2235_v1  ;;  %650 = vmatprep.mubr.bf16.mxu0 %v2490_v31 }
  0x3b   : > { %s448_s27 = scalar_select %p447_p5, %s2586_s29, 1  ;;  %v2241_v5 = vld [vmem:[%s3012_s3 + $0x14] ss:$8 sps:$4 sm:$0xff]   ;;  %739 = vmatprep.subr.bf16.mxu1 %v2237_v2  ;;  %v2245_v7 = vld [vmem:[%s3012_s3 + $0x10] ss:$8 sps:$4 sm:$0xff]   ;;  %619 = vmatpush1.bf16.msra.mxu0 %v2239_v3  ;;  %v2761_v49 = vshrl.u32 %v518_v48, 7 }
  0x3c   : > { %v2243_v6 = vld [vmem:[%s3012_s3 + $0x94] ss:$8 sps:$4 sm:$0xff]   ;;  %v2246_v8 = vld [vmem:[%s3012_s3 + $0x90] ss:$8 sps:$4 sm:$0xff]   ;;  %v2247_v9 = vld [vmem:[%s3012_s3 + $0x24] ss:$8 sps:$4 sm:$0xff]   ;;  %740 = vmatpush1.bf16.msra.mxu1 %v2240_v4  ;;  %620 = vmatprep.subr.bf16.mxu0 %v2241_v5 }
  0x3d   : > { %s1948_s14 = sshll.u32 %s448_s27, 3  ;;  %v2249_v10 = vld [vmem:[%s3012_s3 + $0xa4] ss:$8 sps:$4 sm:$0xff]   ;;  %741 = vmatprep.subr.bf16.mxu1 %v2243_v6  ;;  %v2251_v15 = vld [vmem:[%s3012_s3 + $0x20] ss:$8 sps:$4 sm:$0xff]   ;;  %771 = vmatprep.mubr.bf16.mxu1 %v2490_v31  ;;  %v2491_v50 = vmov 0.0  }
  0x3e   : > { %s450_s21 = scalar_lea.vmem %s3009_s0, %s1948_s14  ;;  %v2252_v16 = vld [vmem:[%s3012_s3 + $0xa0] ss:$8 sps:$4 sm:$0xff]   ;;  %v2253_v17 = vld [vmem:[%s3012_s3 + $0x34] ss:$8 sps:$4 sm:$0xff]   ;;  %v2257_v19 = vld [vmem:[%s3012_s3 + $0x30] ss:$8 sps:$4 sm:$0xff]  }
  0x3f   : > { %v2653_v0 = vld [vmem:[%s450_s21] sm:$0xff]  ;;  %621 = vmatpush1.bf16.msra.mxu0 %v2245_v7  ;;  %v2255_v18 = vld [vmem:[%s3012_s3 + $0xb4] ss:$8 sps:$4 sm:$0xff]   ;;  %v2258_v20 = vld [vmem:[%s3012_s3 + $0xb0] ss:$8 sps:$4 sm:$0xff]   ;;  %v2766_v51 = vsub.s32 0, %v2761_v49 }
  0x40   : > { %455 = vadd.xlane.f32.xlu0 %v2653_v0  ;;  %742 = vmatpush1.bf16.msra.mxu1 %v2246_v8  ;;  %v2259_v21 = vld [vmem:[%s3012_s3 + $0x44] ss:$8 sps:$4 sm:$0xff]   ;;  %v2263_v23 = vld [vmem:[%s3012_s3 + $0x40] ss:$8 sps:$4 sm:$0xff]   ;;  %v2265_v25 = vld [vmem:[%s3012_s3 + $0x54] ss:$8 sps:$4 sm:$0xff]  }
  0x41   : > { %622 = vmatprep.subr.bf16.mxu0 %v2247_v9  ;;  %743 = vmatprep.subr.bf16.mxu1 %v2249_v10  ;;  %v2261_v22 = vld [vmem:[%s3012_s3 + $0xc4] ss:$8 sps:$4 sm:$0xff]   ;;  %v2264_v24 = vld [vmem:[%s3012_s3 + $0xc0] ss:$8 sps:$4 sm:$0xff]   ;;  %v2267_v26 = vld [vmem:[%s3012_s3 + $0xd4] ss:$8 sps:$4 sm:$0xff]  }
  0x42   : > { %v2269_v27 = vld [vmem:[%s3012_s3 + $0x50] ss:$8 sps:$4 sm:$0xff]   ;;  %v2271_v29 = vld [vmem:[%s3012_s3 + $0x64] ss:$8 sps:$4 sm:$0xff]   ;;  %v2275_v32 = vld [vmem:[%s3012_s3 + $0x60] ss:$8 sps:$4 sm:$0xff]  }
  0x43   : > { %623 = vmatpush1.bf16.msra.mxu0 %v2251_v15  ;;  %v2270_v28 = vld [vmem:[%s3012_s3 + $0xd0] ss:$8 sps:$4 sm:$0xff]   ;;  %v2273_v30 = vld [vmem:[%s3012_s3 + $0xe4] ss:$8 sps:$4 sm:$0xff]   ;;  %v2276_v33 = vld [vmem:[%s3012_s3 + $0xe0] ss:$8 sps:$4 sm:$0xff]  }
  0x44   : > { %744 = vmatpush1.bf16.msra.mxu1 %v2252_v16  ;;  %624 = vmatprep.subr.bf16.mxu0 %v2253_v17  ;;  %v2277_v34 = vld [vmem:[%s3012_s3 + $0x74] ss:$8 sps:$4 sm:$0xff]   ;;  %v2281_v36 = vld [vmem:[%s3012_s3 + $0x70] ss:$8 sps:$4 sm:$0xff]   ;;  %v1949_v42 = vld [vmem:[%s3010_s1] ss:$0 sm:$0xff] }
  0x45   : > { %745 = vmatprep.subr.bf16.mxu1 %v2255_v18  ;;  %v2279_v35 = vld [vmem:[%s3012_s3 + $0xf4] ss:$8 sps:$4 sm:$0xff]   ;;  %v2282_v37 = vld [vmem:[%s3012_s3 + $0xf0] ss:$8 sps:$4 sm:$0xff]   ;;  %v1950_v44 = vld [vmem:[%s3011_s2] ss:$0 sm:$0xff] }
  0x46   : > { %v514_v52 = vld [vmem:[%s3013_s4] sm:$0x3]  ;;  %v2772_v53 = vsub.s32 1, %v2761_v49  ;;  %v515_v54 = vld [vmem:[%s3013_s4 + $0x2] sm:$0x3]  ;;  %vm2492_vm0 = vmmov 0  }
  0x47   : > { %625 = vmatpush1.bf16.msra.mxu0 %v2257_v19  ;;  %v521_v55 = vrot.slane %v514_v52, %v2766_v51  ;;  %v529_v57 = vrot.slane %v515_v54, %v2766_v51  ;;  %s2493_s20 = smov 64   ;;  %vm785_vm1 = vcmask 523264   ;;  %vm911_vm2 = vcmask 1043456   ;;  %v2285_v48 = vld [vmem:[%s3014_s5 + $0x20] sm:$0xff]   ;;  %s444_s30 = sand.u32 1, %s2477_s26  }
  0x48   : > { %746 = vmatpush1.bf16.msra.mxu1 %v2258_v20  ;;  %626 = vmatprep.subr.bf16.mxu0 %v2259_v21  ;;  %v533_v56 = vrot.slane %v515_v54, %v2772_v53  ;;  %v525_v8 = vrot.slane %v514_v52, %v2772_v53  ;;  %vm881_vm3 = vcmask 64512   ;;  %v2286_v54 = vld [vmem:[%s3014_s5 + $0x10] sm:$0xff]   ;;  %s1947_s16 = sshll.u32 %s444_s30, 3  ;;  %s2066_s15 = sshll.u32 %s2586_s29, 7 }
  0x49   : > { %747 = vmatprep.subr.bf16.mxu1 %v2261_v22  ;;  %s446_s23 = scalar_lea.vmem [#allocation5], %s1947_s16  ;;  %s2967_s17 = scalar_lea.hbm %s3022_s13, %s2066_s15 }
  0x4a   : > { %s1870_s21 = sshll.u32 %s446_s23, 4  ;;  %s1857_s24 = scalar_lea.sflag [#allocation4], %s444_s30  ;;  %s2969_s21 = int_to_ptr.vmem [resolvable:$true] %s1870_s21 }
  0x4b   : > { %627 = vmatpush1.bf16.msra.mxu0 %v2263_v23  ;;  %s2419_s11 = scalar_lea.vmem %s2969_s21, 128  ;;  %p3041_p9 = scmp.ne.s32.totalorder %s3033_s18, 0 }
  0x4c   : > { %748 = vmatpush1.bf16.msra.mxu1 %v2264_v24  ;;  %628 = vmatprep.subr.bf16.mxu0 %v2265_v25  ;;  %p2420_p6 = scmp.ne.s32.totalorder %s2969_s21, %s2419_s11  ;;  %s2494_s29 = smov [#allocation5]  }
  0x4d   : > { %749 = vmatprep.subr.bf16.mxu1 %v2267_v26  ;;  %s2423_s16 = sshll.u32 %s2494_s29, 4  ;;  %s2424_s16 = int_to_ptr.vmem [resolvable:$false] %s2423_s16 }
  0x4e   : > { %p2421_p10 = pnand %p2420_p6, %p3041_p9  ;;  %s2425_s27 = scalar_lea.vmem %s2424_s16, 256 }
  0x4f   : > { %629 = vmatpush1.bf16.msra.mxu0 %v2269_v27  ;;  %p2426_p2 = scmp.lt.s32.totalorder %s2969_s21, %s2424_s16  ;;  %p2427_p3 = scmp.lt.s32.totalorder %s2425_s27, %s2419_s11 }
  0x50   : > { %750 = vmatpush1.bf16.msra.mxu1 %v2270_v28  ;;  %630 = vmatprep.subr.bf16.mxu0 %v2271_v29  ;;  %p2422_p12 = pneg %p2421_p10 }
  0x51   : > { %751 = vmatprep.subr.bf16.mxu1 %v2273_v30  ;;  %p2428_p4 = por %p2427_p3, %p2426_p2 }
  0x53   : > { %631 = vmatpush1.bf16.msra.mxu0 %v2275_v32  ;;  %p2429_p7 = pnand %p2428_p4, %p2422_p12 }
  0x54   : > { %752 = vmatpush1.bf16.msra.mxu1 %v2276_v33  ;;  %632 = vmatprep.subr.bf16.mxu0 %v2277_v34 }
  0x55   : > { %753 = vmatprep.subr.bf16.mxu1 %v2279_v35 }
  0x57   : > { %633 = vmatpush1.bf16.msra.mxu0 %v2281_v36 }
  0x58   : > { %754 = vmatpush1.bf16.msra.mxu1 %v2282_v37  ;;  %2131 = vmatprep.subr.bf16.mxu0 %v2491_v50 }
  0x59   : > { %2137 = vmatprep.subr.bf16.mxu1 %v2491_v50 }
  0xcd   : > { %v456_v11 = vpop.xlane.xlu0 %455 }
  0xce   : > { %v458_v12 = vmul.f32 0.0078125, %v456_v11 }
  0xd0   : > { %v459_v13 = vsub.f32 %v2653_v0, %v458_v12 }
  0xd2   : > { %v460_v14 = vmul.f32 %v459_v13, %v459_v13 }
  0xd4   : > { %461 = vadd.xlane.f32.xlu0 %v460_v14 }
 0x161   : > { %v462_v38 = vpop.xlane.xlu0 %461 }
 0x162   : > { %v463_v39 = vmul.f32 0.0078125, %v462_v38 }
 0x164   : > { %v464_v40 = vadd.f32 1e-05, %v463_v39 }
 0x166   : > { %2371 = vrsqrt.f32 %v464_v40 }
 0x170   : > { %v2372_v41 = vpop.eup %2371 }
 0x171   : > { %v466_v43 = vmul.f32 %v2372_v41, %v459_v13 }
 0x173   : > { %v473_v45 = vmul.f32 %v1949_v42, %v466_v43  ;;  %v2283_v43 = vld [vmem:[%s3014_s5] sm:$0xff]  }
 0x175   : > { %v480_v46 = vadd.f32 %v1950_v44, %v473_v45 }
 0x177   : > { %v481_v47 = vpack.c.bf16 %v480_v46, %v480_v46 }
 0x179   : > { %651 = vmatmul.mubr.bf16.vlgmr.msra.gmra.mrb[0].mxu0 %v481_v47  ;;  %772 = vmatmul.mubr.bf16.vlgmr.msra.gmra.mrb[0].mxu1 %v481_v47  ;;  %v2284_v47 = vld [vmem:[%s3014_s5 + $0x8] sm:$0xff]  }
 0x17a   : > { %2133 = vmatprep.mubr.msk.bf16.mxu0 %vm2492_vm0, %v2491_v50  ;;  %2139 = vmatprep.mubr.msk.bf16.mxu1 %vm2492_vm0, %v2491_v50 }
 0x24c   : > { %v652_v58 = vpop.f32.mrb[0].mxu0  ;;  %v773_v59 = vpop.f32.mrb[0].mxu1 }
 0x24d   : > { %v653_v60 = vadd.f32 %v652_v58, %v521_v55  ;;  %v654_v61 = vpop.f32.mrb[1].mxu0  ;;  %v775_v62 = vpop.f32.mrb[1].mxu1  ;;  %v774_v4 = vadd.f32 %v773_v59, %v529_v57  ;;  %v2287_v55 = vld [vmem:[%s3014_s5 + $0x28] sm:$0xff]   ;;  %v2289_v57 = vld [vmem:[%s3014_s5 + $0x30] sm:$0xff]   ;;  %v2290_v58 = vld [vmem:[%s3014_s5 + $0x38] sm:$0xff]  }
 0x24e   : > { %v776_v63 = vadd.f32 %v775_v62, %v533_v56  ;;  %v656_v1 = vpop.f32.mrb[2].mxu0  ;;  %v777_v2 = vpop.f32.mrb[2].mxu1  ;;  %v655_v10 = vadd.f32 %v654_v61, %v525_v8  ;;  %v2288_v56 = vld [vmem:[%s3014_s5 + $0x18] sm:$0xff]  }
 0x24f   : > { %v780_v3 = vpack.c.bf16 %v653_v60, %v653_v60  ;;  %v657_v5 = vpop.f32.mrb[3].mxu0  ;;  %v778_v6 = vpop.f32.mrb[3].mxu1  ;;  %v781_v7 = vpack.c.bf16 %v774_v4, %v774_v4 }
 0x250   : > { %v906_v13 = vpack.c.bf16 %v655_v10, %v655_v10  ;;  %v907_v16 = vpack.c.bf16 %v776_v63, %v776_v63  ;;  %v1997_v10 = vld [vmem:[%s3015_s6] ss:$0 sm:$0xff] }
 0x251   : > { %783 = vrot.lane.b32.xlu1 %v780_v3, %s2493_s20 }
 0x252   : > { %v913_v15 = vsel %vm911_vm2, %v906_v13, 0  ;;  %v959_v17 = vsel %vm911_vm2, %v907_v16, 0 }
 0x255   : > { %833 = vrot.lane.b32.xlu1 %v781_v7, %s2493_s20 }
 0x2c3   : > { %v784_v9 = vpop.permute.xlu1 %783 }
 0x2c4   : > { %v790_v11 = vsel %vm785_vm1, %v784_v9, 0 }
 0x2c5   : > { %2132 = vmatpush3.bf16.xpose.msra.mxu0 %v790_v11 }
 0x2c6   : > { %2143 = vmatprep.subr.bf16.mxu0 %v2491_v50 }
 0x2c7   : > { %v834_v12 = vpop.permute.xlu1 %833 }
 0x2c8   : > { %v839_v14 = vsel %vm785_vm1, %v834_v12, 0 }
 0x2c9   : > { %2138 = vmatpush3.bf16.xpose.msra.mxu1 %v839_v14 }
 0x2ca   : > { %2149 = vmatprep.subr.bf16.mxu1 %v2491_v50 }
 0x2cc   : > { %2134 = vmatmul.mubr.msk.bf16.vlgmr.msra.gmra.mrb[4].mxu0 %vm785_vm1, %v780_v3 }
 0x2cd   : > { %2144 = vmatpush3.bf16.msra.mxu0 %v913_v15  ;;  %2145 = vmatprep.mubr.msk.bf16.mxu0 %vm2492_vm0, %v2491_v50 }
 0x2ce   : > { %2155 = vmatprep.subr.bf16.mxu0 %v2491_v50 }
 0x2d0   : > { %2140 = vmatmul.mubr.msk.bf16.vlgmr.msra.gmra.mrb[4].mxu1 %vm785_vm1, %v781_v7 }
 0x2d1   : > { %2150 = vmatpush3.bf16.msra.mxu1 %v959_v17  ;;  %2151 = vmatprep.mubr.msk.bf16.mxu1 %vm2492_vm0, %v2491_v50  ;;  %v2293_v17 = vld [vmem:[%s3018_s9 + $0x4] ss:$16 sps:$4 sm:$0xff]  }
 0x2d2   : > { %2167 = vmatprep.subr.bf16.mxu1 %v2491_v50 }
 0x39f   : > { %v826_v18 = vpop.f32.mrb[4].mxu0 }
 0x3a0   : > { %v2135_v19 = vpop.f32.mrb[5].mxu0  ;;  %v882_v20 = vsel %vm881_vm3, %v826_v18, -inf }
 0x3a1   : > { %883 = vmax.xlane.f32.xlu0 %v882_v20  ;;  %v829_v21 = vpop.f32.mrb[6].mxu0  ;;  %v2296_v19 = vld [vmem:[%s3018_s9 + $0xc] ss:$16 sps:$4 sm:$0xff]  }
 0x3a2   : > { %v2136_v22 = vpop.f32.mrb[7].mxu0  ;;  %v2302_v20 = vld [vmem:[%s3018_s9 + $0x2c] ss:$16 sps:$4 sm:$0xff]   ;;  %v2297_v21 = vld [vmem:[%s3018_s9 + $0x20] ss:$16 sps:$4 sm:$0xff]  }
 0x3a3   : > { %v875_v23 = vpop.f32.mrb[4].mxu1  ;;  %v2300_v22 = vld [vmem:[%s3018_s9 + $0x28] ss:$16 sps:$4 sm:$0xff]  }
 0x3a4   : > { %v2141_v24 = vpop.f32.mrb[5].mxu1  ;;  %v885_v25 = vsel %vm881_vm3, %v875_v23, -inf }
 0x3a5   : > { %886 = vmax.xlane.f32.xlu1 %v885_v25  ;;  %v878_v26 = vpop.f32.mrb[6].mxu1  ;;  %v2308_v24 = vld [vmem:[%s3018_s9 + $0x4c] ss:$16 sps:$4 sm:$0xff]   ;;  %v2303_v25 = vld [vmem:[%s3018_s9 + $0x40] ss:$16 sps:$4 sm:$0xff]  }
 0x3a6   : > { %v2142_v27 = vpop.f32.mrb[7].mxu1  ;;  %v2306_v26 = vld [vmem:[%s3018_s9 + $0x48] ss:$16 sps:$4 sm:$0xff]  }
 0x42e   : > { %v884_v28 = vpop.xlane.xlu0 %883 }
 0x42f   : > { %v888_v29 = vsub.f32 %v826_v18, %v884_v28  ;;  %v2294_v18 = vld [vmem:[%s3018_s9 + $0x8] ss:$16 sps:$4 sm:$0xff]  }
 0x431   : > { %v890_v30 = vmul.f32 1.442695, %v888_v29 }
 0x432   : > { %v887_v32 = vpop.xlane.xlu1 %886 }
 0x433   : > { %2373 = vpow2.f32 %v890_v30  ;;  %v889_v33 = vsub.f32 %v875_v23, %v887_v32  ;;  %v2305_v23 = vld [vmem:[%s3018_s9 + $0x44] ss:$16 sps:$4 sm:$0xff]  }
 0x434   : > { %v2311_v32 = vld [vmem:[%s3018_s9 + $0x64] ss:$16 sps:$4 sm:$0xff]  }
 0x435   : > { %v892_v34 = vmul.f32 1.442695, %v889_v33  ;;  %v2314_v33 = vld [vmem:[%s3018_s9 + $0x6c] ss:$16 sps:$4 sm:$0xff]  }
 0x437   : > { %2375 = vpow2.f32 %v892_v34  ;;  %v2309_v34 = vld [vmem:[%s3018_s9 + $0x60] ss:$16 sps:$4 sm:$0xff]  }
 0x43d   : > { %v2374_v35 = vpop.eup %2373 }
 0x43e   : > { %v894_v36 = vsel %vm881_vm3, %v2374_v35, 0.0 }
 0x43f   : > { %895 = vadd.xlane.f32.xlu0 %v894_v36  ;;  %v2317_v36 = vld [vmem:[%s3018_s9 + $0x84] ss:$16 sps:$4 sm:$0xff]  }
 0x441   : > { %v2376_v37 = vpop.eup %2375 }
 0x442   : > { %v897_v38 = vsel %vm881_vm3, %v2376_v37, 0.0 }
 0x443   : > { %898 = vadd.xlane.f32.xlu0 %v897_v38  ;;  %v2315_v38 = vld [vmem:[%s3018_s9 + $0x80] ss:$16 sps:$4 sm:$0xff]  }
 0x4cc   : > { %v896_v39 = vpop.xlane.xlu0 %895 }
 0x4cd   : > { %2377 = vrcp.f32 %v896_v39  ;;  %v2318_v39 = vld [vmem:[%s3018_s9 + $0x88] ss:$16 sps:$4 sm:$0xff]  }
 0x4d0   : > { %v899_v40 = vpop.xlane.xlu0 %898 }
 0x4d1   : > { %2379 = vrcp.f32 %v899_v40  ;;  %v2323_v40 = vld [vmem:[%s3018_s9 + $0xa4] ss:$16 sps:$4 sm:$0xff]  }
 0x4d7   : > { %v2378_v41 = vpop.eup %2377 }
 0x4d8   : > { %v902_v42 = vmul.f32 %v2378_v41, %v2374_v35  ;;  %v2312_v35 = vld [vmem:[%s3018_s9 + $0x68] ss:$16 sps:$4 sm:$0xff]   ;;  %v2326_v41 = vld [vmem:[%s3018_s9 + $0xac] ss:$16 sps:$4 sm:$0xff]  }
 0x4da   : > { %v904_v44 = vpack.c.bf16 %v902_v42, %v902_v42  ;;  %v2321_v42 = vld [vmem:[%s3018_s9 + $0xa0] ss:$16 sps:$4 sm:$0xff]  }
 0x4db   : > { %v2380_v45 = vpop.eup %2379 }
 0x4dc   : > { %v903_v46 = vmul.f32 %v2380_v45, %v2376_v37  ;;  %2146 = vmatmul.mubr.msk.bf16.vlgmr.msra.gmra.mrb[8].mxu0 %vm881_vm3, %v904_v44  ;;  %v2320_v37 = vld [vmem:[%s3018_s9 + $0x8c] ss:$16 sps:$4 sm:$0xff]   ;;  %v2329_v44 = vld [vmem:[%s3018_s9 + $0xc4] ss:$16 sps:$4 sm:$0xff]  }
 0x4dd   : > { %2156 = vmatpush3.bf16.msra.mxu0 %v2283_v43  ;;  %2163 = vmatprep.mubr.msk.bf16.mxu0 %vm2492_vm0, %v2491_v50  ;;  %v2324_v43 = vld [vmem:[%s3018_s9 + $0xa8] ss:$16 sps:$4 sm:$0xff]   ;;  %v2332_v45 = vld [vmem:[%s3018_s9 + $0xcc] ss:$16 sps:$4 sm:$0xff]  }
 0x4de   : > { %v905_v52 = vpack.c.bf16 %v903_v46, %v903_v46  ;;  %2157 = vmatprep.subr.bf16.mxu0 %v2491_v50  ;;  %v2327_v46 = vld [vmem:[%s3018_s9 + $0xc0] ss:$16 sps:$4 sm:$0xff]  }
 0x4e0   : > { %2152 = vmatmul.mubr.msk.bf16.vlgmr.msra.gmra.mrb[8].mxu1 %vm881_vm3, %v905_v52  ;;  %v2333_v52 = vld [vmem:[%s3018_s9 + $0xe0] ss:$16 sps:$4 sm:$0xff]  }
 0x4e1   : > { %2158 = vmatpush3.bf16.msra.mxu0 %v2284_v47  ;;  %2168 = vmatpush3.bf16.msra.mxu1 %v2285_v48  ;;  %v2330_v47 = vld [vmem:[%s3018_s9 + $0xc8] ss:$16 sps:$4 sm:$0xff]   ;;  %v2335_v48 = vld [vmem:[%s3018_s9 + $0xe4] ss:$16 sps:$4 sm:$0xff]  }
 0x4e2   : > { %2159 = vmatprep.subr.bf16.mxu0 %v2491_v50  ;;  %2169 = vmatprep.subr.bf16.mxu1 %v2491_v50 }
 0x4e3   : > { %2175 = vmatprep.mubr.msk.bf16.mxu1 %vm2492_vm0, %v2491_v50 }
 0x4e5   : > { %2160 = vmatpush3.bf16.msra.mxu0 %v2286_v54  ;;  %2170 = vmatpush3.bf16.msra.mxu1 %v2287_v55  ;;  %v2336_v54 = vld [vmem:[%s3018_s9 + $0xe8] ss:$16 sps:$4 sm:$0xff]   ;;  %v2338_v55 = vld [vmem:[%s3018_s9 + $0xec] ss:$16 sps:$4 sm:$0xff]  }
 0x4e6   : > { %2161 = vmatprep.subr.bf16.mxu0 %v2491_v50  ;;  %2171 = vmatprep.subr.bf16.mxu1 %v2491_v50 }
 0x4e9   : > { %2162 = vmatpush3.bf16.msra.mxu0 %v2288_v56  ;;  %2172 = vmatpush3.bf16.msra.mxu1 %v2289_v57  ;;  %v2339_v56 = vld [vmem:[#allocation2 + $0x40] sm:$0xff]  }
 0x4ea   : > { %2173 = vmatprep.subr.bf16.mxu1 %v2491_v50  ;;  %1405 = vmatprep.subr.bf16.mxu0 %v2293_v17  ;;  %v2340_v57 = vld [vmem:[#allocation2 + $0xc0] sm:$0xff]   ;;  %v2354_v17 = vld [vmem:[#allocation2 + $0x98] sm:$0xff]  }
 0x4ed   : > { %2174 = vmatpush3.bf16.msra.mxu1 %v2290_v58 }
 0x4ee   : > { %1446 = vmatprep.subr.bf16.mxu1 %v2296_v19  ;;  %v2356_v19 = vld [vmem:[#allocation2 + $0xe0] sm:$0xff]  }
 0x5af   : > { %v949_v59 = vpop.f32.mrb[8].mxu0 }
 0x5b0   : > { %v1001_v60 = vpack.c.bf16 %v949_v59, %v949_v59  ;;  %v2147_v61 = vpop.f32.mrb[9].mxu0 }
 0x5b1   : > { %v952_v62 = vpop.f32.mrb[10].mxu0 }
 0x5b2   : > { %v2148_v63 = vpop.f32.mrb[11].mxu0  ;;  %2164 = vmatmul.mubr.msk.bf16.vlgmr.msra.gmra.mrb[12].mxu0 %vm785_vm1, %v1001_v60  ;;  %v1998_v62 = vld [vmem:[%s3016_s7] ss:$0 sm:$0xff] }
 0x5b3   : > { %v995_v1 = vpop.f32.mrb[8].mxu1  ;;  %1437 = vmatprep.mubr.bf16.mxu0 %v2490_v31 }
 0x5b4   : > { %v1002_v2 = vpack.c.bf16 %v995_v1, %v995_v1  ;;  %v2153_v3 = vpop.f32.mrb[9].mxu1  ;;  %v1999_v1 = vld [vmem:[%s3017_s8] ss:$0 sm:$0xff] }
 0x5b5   : > { %v998_v4 = vpop.f32.mrb[10].mxu1 }
 0x5b6   : > { %v2154_v5 = vpop.f32.mrb[11].mxu1  ;;  %2176 = vmatmul.mubr.msk.bf16.vlgmr.msra.gmra.mrb[12].mxu1 %vm785_vm1, %v1002_v2  ;;  %v2341_v4 = vld [vmem:[#allocation2] sm:$0xff]  }
 0x5b7   : > { %1478 = vmatprep.mubr.bf16.mxu1 %v2490_v31  ;;  %v2291_v31 = vld [vmem:[%s3018_s9] ss:$16 sps:$4 sm:$0xff]   ;;  %1447 = vmatpush1.bf16.msra.mxu1 %v2294_v18 }
 0x5b8   : > { %1406 = vmatpush1.bf16.msra.mxu0 %v2291_v31  ;;  %1448 = vmatprep.subr.bf16.mxu1 %v2302_v20  ;;  %v2342_v5 = vld [vmem:[#allocation2 + $0x80] sm:$0xff]   ;;  %v2353_v31 = vld [vmem:[#allocation2 + $0x18] sm:$0xff]  }
 0x5b9   : > { %v2355_v18 = vld [vmem:[#allocation2 + $0x60] sm:$0xff]  }
 0x5ba   : > { %v2358_v20 = vld [vmem:[#allocation2 + $0xa0] sm:$0xff]  }
 0x5bb   : > { %1449 = vmatpush1.bf16.msra.mxu1 %v2300_v22  ;;  %v2360_v22 = vld [vmem:[#allocation2 + $0xe8] sm:$0xff]  }
 0x5bc   : > { %1450 = vmatprep.subr.bf16.mxu1 %v2308_v24  ;;  %v2362_v24 = vld [vmem:[#allocation2 + $0xa8] sm:$0xff]  }
 0x5bf   : > { %1451 = vmatpush1.bf16.msra.mxu1 %v2306_v26  ;;  %v2364_v26 = vld [vmem:[#allocation2 + $0xf0] sm:$0xff]  }
 0x5c0   : > { %1452 = vmatprep.subr.bf16.mxu1 %v2314_v33  ;;  %v2370_v33 = vld [vmem:[#allocation2 + $0xb8] sm:$0xff]  }
 0x5c3   : > { %1453 = vmatpush1.bf16.msra.mxu1 %v2312_v35  ;;  %v1223_v35 = vld [vmem:[%s3019_s10] sm:$0xf] }
 0x5c4   : > { %1454 = vmatprep.subr.bf16.mxu1 %v2320_v37  ;;  %v1228_v37 = vrot.slane %v1223_v35, %v2766_v51 }
 0x5c7   : > { %1455 = vmatpush1.bf16.msra.mxu1 %v2318_v39  ;;  %v1232_v39 = vrot.slane %v1223_v35, %v2772_v53 }
 0x5c8   : > { %1456 = vmatprep.subr.bf16.mxu1 %v2326_v41 }
 0x5cb   : > { %1457 = vmatpush1.bf16.msra.mxu1 %v2324_v43 }
 0x5cc   : > { %1458 = vmatprep.subr.bf16.mxu1 %v2332_v45 }
 0x5cf   : > { %1459 = vmatpush1.bf16.msra.mxu1 %v2330_v47 }
 0x5d0   : > { %1460 = vmatprep.subr.bf16.mxu1 %v2338_v55 }
 0x5d3   : > { %1461 = vmatpush1.bf16.msra.mxu1 %v2336_v54 }
 0x5d4   : > { %2109 = vmatprep.subr.bf16.mxu1 %v2340_v57 }
 0x685   : > { %v1080_v50 = vpop.f32.mrb[12].mxu0 }
 0x686   : > { %v2165_v6 = vpop.f32.mrb[13].mxu0 }
 0x687   : > { %v1083_v7 = vpop.f32.mrb[14].mxu0  ;;  %v2343_v6 = vld [vmem:[#allocation2 + $0x48] sm:$0xff]  }
 0x688   : > { %v2166_v8 = vpop.f32.mrb[15].mxu0  ;;  %v2344_v7 = vld [vmem:[#allocation2 + $0xc8] sm:$0xff]  }
 0x689   : > { %v1147_v9 = vpop.f32.mrb[12].mxu1  ;;  %v2345_v8 = vld [vmem:[#allocation2 + $0x8] sm:$0xff]  }
 0x68a   : > { %v1153_v11 = vadd.f32 %v1147_v9, %v1080_v50  ;;  %v2177_v12 = vpop.f32.mrb[13].mxu1  ;;  %v2346_v9 = vld [vmem:[#allocation2 + $0x88] sm:$0xff]  }
 0x68b   : > { %v1150_v13 = vpop.f32.mrb[14].mxu1  ;;  %v2349_v12 = vld [vmem:[#allocation2 + $0x10] sm:$0xff]  }
 0x68c   : > { %v1161_v14 = vadd.f32 %v1997_v10, %v1153_v11  ;;  %v2178_v15 = vpop.f32.mrb[15].mxu1  ;;  %v2347_v10 = vld [vmem:[#allocation2 + $0x50] sm:$0xff]  }
 0x68d   : > { %v2348_v11 = vld [vmem:[#allocation2 + $0xd0] sm:$0xff]   ;;  %v2352_v15 = vld [vmem:[#allocation2 + $0xd8] sm:$0xff]  }
 0x68e   : > { %v2845_v16 = vadd.f32 %v1161_v14, %v2653_v0  ;;  %v2299_v0 = vld [vmem:[%s3018_s9 + $0x24] ss:$16 sps:$4 sm:$0xff]   ;;  %v2351_v14 = vld [vmem:[#allocation2 + $0x58] sm:$0xff]  }
 0x68f   : > { %1407 = vmatprep.subr.bf16.mxu0 %v2299_v0  ;;  %v2350_v13 = vld [vmem:[#allocation2 + $0x90] sm:$0xff]   ;;  %v2357_v0 = vld [vmem:[#allocation2 + $0x20] sm:$0xff]  }
 0x690   : > { %1165 = vadd.xlane.f32.xlu0 %v2845_v16  ;;  %1408 = vmatpush1.bf16.msra.mxu0 %v2297_v21  ;;  %v2359_v21 = vld [vmem:[#allocation2 + $0x68] sm:$0xff]  }
 0x691   : > { %1409 = vmatprep.subr.bf16.mxu0 %v2305_v23  ;;  %v2361_v23 = vld [vmem:[#allocation2 + $0x28] sm:$0xff]  }
 0x694   : > { %1410 = vmatpush1.bf16.msra.mxu0 %v2303_v25  ;;  %v2363_v25 = vld [vmem:[#allocation2 + $0x70] sm:$0xff]  }
 0x695   : > { %1411 = vmatprep.subr.bf16.mxu0 %v2311_v32  ;;  %v2369_v32 = vld [vmem:[#allocation2 + $0x38] sm:$0xff]  }
 0x698   : > { %1412 = vmatpush1.bf16.msra.mxu0 %v2309_v34  ;;  %v1235_v34 = vsub.s32 2, %v2761_v49 }
 0x699   : > { %1413 = vmatprep.subr.bf16.mxu0 %v2317_v36  ;;  %v1239_v36 = vsub.s32 3, %v2761_v49 }
 0x69c   : > { %1414 = vmatpush1.bf16.msra.mxu0 %v2315_v38  ;;  %v1236_v38 = vrot.slane %v1223_v35, %v1235_v34 }
 0x69d   : > { %1415 = vmatprep.subr.bf16.mxu0 %v2323_v40  ;;  %v1240_v40 = vrot.slane %v1223_v35, %v1239_v36 }
 0x6a0   : > { %1416 = vmatpush1.bf16.msra.mxu0 %v2321_v42 }
 0x6a1   : > { %1417 = vmatprep.subr.bf16.mxu0 %v2329_v44 }
 0x6a4   : > { %1418 = vmatpush1.bf16.msra.mxu0 %v2327_v46 }
 0x6a5   : > { %1419 = vmatprep.subr.bf16.mxu0 %v2335_v48 }
 0x6a8   : > { %1420 = vmatpush1.bf16.msra.mxu0 %v2333_v52 }
 0x6a9   : > { %2087 = vmatprep.subr.bf16.mxu0 %v2339_v56 }
 0x71d   : > { %v1166_v27 = vpop.xlane.xlu0 %1165 }
 0x71e   : > { %v1167_v28 = vmul.f32 0.0078125, %v1166_v27  ;;  %v2365_v27 = vld [vmem:[#allocation2 + $0x30] sm:$0xff]  }
 0x720   : > { %v1168_v29 = vsub.f32 %v2845_v16, %v1167_v28  ;;  %v2366_v28 = vld [vmem:[#allocation2 + $0xb0] sm:$0xff]  }
 0x722   : > { %v1169_v30 = vmul.f32 %v1168_v29, %v1168_v29 }
 0x724   : > { %1170 = vadd.xlane.f32.xlu0 %v1169_v30  ;;  %v2368_v30 = vld [vmem:[#allocation2 + $0xf8] sm:$0xff]  }
 0x7b1   : > { %v1171_v58 = vpop.xlane.xlu0 %1170 }
 0x7b2   : > { %v1172_v59 = vmul.f32 0.0078125, %v1171_v58 }
 0x7b4   : > { %v1173_v60 = vadd.f32 1e-05, %v1172_v59 }
 0x7b6   : > { %2381 = vrsqrt.f32 %v1173_v60 }
 0x7c0   : > { %v2382_v61 = vpop.eup %2381 }
 0x7c1   : > { %v1175_v63 = vmul.f32 %v2382_v61, %v1168_v29  ;;  %v2367_v29 = vld [vmem:[#allocation2 + $0x78] sm:$0xff]  }
 0x7c3   : > { %v1182_v2 = vmul.f32 %v1998_v62, %v1175_v63 }
 0x7c5   : > { %v1189_v3 = vadd.f32 %v1999_v1, %v1182_v2 }
 0x7c7   : > { %v1190_v50 = vpack.c.bf16 %v1189_v3, %v1189_v3 }
 0x7c9   : > { %1438 = vmatmul.mubr.bf16.vlgmr.msra.gmra.mrb[16].mxu0 %v1190_v50  ;;  %1479 = vmatmul.mubr.bf16.vlgmr.msra.gmra.mrb[16].mxu1 %v1190_v50 }
 0x7ca   : > { %2088 = vmatpush3.bf16.msra.mxu0 %v2341_v4  ;;  %2110 = vmatpush3.bf16.msra.mxu1 %v2342_v5 }
 0x7cb   : > { %2089 = vmatprep.subr.bf16.mxu0 %v2343_v6  ;;  %2111 = vmatprep.subr.bf16.mxu1 %v2344_v7 }
 0x7ce   : > { %2090 = vmatpush3.bf16.msra.mxu0 %v2345_v8  ;;  %2112 = vmatpush3.bf16.msra.mxu1 %v2346_v9 }
 0x7cf   : > { %2091 = vmatprep.subr.bf16.mxu0 %v2347_v10  ;;  %2113 = vmatprep.subr.bf16.mxu1 %v2348_v11 }
 0x7d2   : > { %2092 = vmatpush3.bf16.msra.mxu0 %v2349_v12  ;;  %2114 = vmatpush3.bf16.msra.mxu1 %v2350_v13 }
 0x7d3   : > { %2093 = vmatprep.subr.bf16.mxu0 %v2351_v14  ;;  %2115 = vmatprep.subr.bf16.mxu1 %v2352_v15 }
 0x7d6   : > { %2094 = vmatpush3.bf16.msra.mxu0 %v2353_v31  ;;  %2116 = vmatpush3.bf16.msra.mxu1 %v2354_v17  ;;  %v2032_v31 = vld [vmem:[%s3021_s12] ss:$0 sm:$0xff] }
 0x7d7   : > { %2095 = vmatprep.subr.bf16.mxu0 %v2355_v18  ;;  %2117 = vmatprep.subr.bf16.mxu1 %v2356_v19 }
 0x7da   : > { %2096 = vmatpush3.bf16.msra.mxu0 %v2357_v0  ;;  %2118 = vmatpush3.bf16.msra.mxu1 %v2358_v20 }
 0x7db   : > { %2097 = vmatprep.subr.bf16.mxu0 %v2359_v21  ;;  %2119 = vmatprep.subr.bf16.mxu1 %v2360_v22 }
 0x7de   : > { %2098 = vmatpush3.bf16.msra.mxu0 %v2361_v23  ;;  %2120 = vmatpush3.bf16.msra.mxu1 %v2362_v24 }
 0x7df   : > { %2099 = vmatprep.subr.bf16.mxu0 %v2363_v25  ;;  %2121 = vmatprep.subr.bf16.mxu1 %v2364_v26 }
 0x7e2   : > { %2100 = vmatpush3.bf16.msra.mxu0 %v2365_v27  ;;  %2122 = vmatpush3.bf16.msra.mxu1 %v2366_v28 }
 0x7e3   : > { %2101 = vmatprep.subr.bf16.mxu0 %v2367_v29  ;;  %2123 = vmatprep.subr.bf16.mxu1 %v2368_v30 }
 0x7e6   : > { %2102 = vmatpush3.bf16.msra.mxu0 %v2369_v32  ;;  %2124 = vmatpush3.bf16.msra.mxu1 %v2370_v33 }
 0x89c   : > { %v1439_v41 = vpop.f32.mrb[16].mxu0  ;;  %v1480_v42 = vpop.f32.mrb[16].mxu1 }
 0x89d   : > { %v1440_v43 = vadd.f32 %v1439_v41, %v1228_v37  ;;  %v1481_v44 = vadd.f32 %v1480_v42, %v1236_v38  ;;  %v1441_v45 = vpop.f32.mrb[17].mxu0  ;;  %v1482_v46 = vpop.f32.mrb[17].mxu1 }
 0x89e   : > { %v1442_v47 = vadd.f32 %v1441_v45, %v1232_v39  ;;  %v1483_v48 = vadd.f32 %v1482_v46, %v1240_v40  ;;  %v1443_v52 = vpop.f32.mrb[18].mxu0  ;;  %v1484_v54 = vpop.f32.mrb[18].mxu1 }
 0x89f   : > { %v1491_v55 = vmul.f32 0.70710677, %v1440_v43  ;;  %v1493_v56 = vmul.f32 0.70710677, %v1481_v44  ;;  %v1444_v51 = vpop.f32.mrb[19].mxu0  ;;  %v1485_v58 = vpop.f32.mrb[19].mxu1 }
 0x8a0   : > { %v1492_v57 = vmul.f32 0.70710677, %v1442_v47  ;;  %v1494_v49 = vmul.f32 0.70710677, %v1483_v48  ;;  %v1487_v62 = vmul.f32 0.5, %v1440_v43  ;;  %v1489_v2 = vmul.f32 0.5, %v1481_v44 }
 0x8a1   : > { %2383 = verf.f32 %v1491_v55  ;;  %v1488_v3 = vmul.f32 0.5, %v1442_v47  ;;  %v1490_v50 = vmul.f32 0.5, %v1483_v48 }
 0x8a2   : > { %2385 = verf.f32 %v1493_v56 }
 0x8a3   : > { %2387 = verf.f32 %v1492_v57 }
 0x8a4   : > { %2389 = verf.f32 %v1494_v49 }
 0x8ab   : > { %v2384_v53 = vpop.eup %2383 }
 0x8ac   : > { %v2386_v59 = vpop.eup %2385  ;;  %v1499_v60 = vadd.f32 1.0, %v2384_v53 }
 0x8ad   : > { %v2388_v61 = vpop.eup %2387  ;;  %v1501_v63 = vadd.f32 1.0, %v2386_v59 }
 0x8ae   : > { %v2390_v1 = vpop.eup %2389  ;;  %v1500_v4 = vadd.f32 1.0, %v2388_v61  ;;  %v1503_v5 = vmul.f32 %v1499_v60, %v1487_v62 }
 0x8af   : > { %v1502_v6 = vadd.f32 1.0, %v2390_v1  ;;  %v1505_v7 = vmul.f32 %v1501_v63, %v1489_v2 }
 0x8b0   : > { %v1504_v8 = vmul.f32 %v1500_v4, %v1488_v3  ;;  %v1507_v11 = vpack.c.bf16 %v1503_v5, %v1503_v5 }
 0x8b1   : > { %v1506_v9 = vmul.f32 %v1502_v6, %v1490_v50  ;;  %v1509_v13 = vpack.c.bf16 %v1505_v7, %v1505_v7 }
 0x8b2   : > { %v1508_v10 = vpack.c.bf16 %v1504_v8, %v1504_v8 }
 0x8b3   : > { %v1510_v12 = vpack.c.bf16 %v1506_v9, %v1506_v9 }
 0x8b4   : > { %1806 = vmatprep.mubr.bf16.mxu0 %v1508_v10 }
 0x8b5   : > { %1846 = vmatprep.mubr.bf16.mxu1 %v1510_v12  ;;  %1807 = vmatmul.mubr.bf16.vlgmr.msra.gmra.mrb[20].mxu0 %v1507_v11 }
 0x8b6   : > { %1847 = vmatmul.mubr.bf16.vlgmr.msra.gmra.mrb[20].mxu1 %v1509_v13 }
 0x988   : > { %v2103_v14 = vpop.f32.mrb[20].mxu0 }
 0x989   : > { %v2125_v15 = vpop.f32.mrb[20].mxu1  ;;  %v2104_v17 = vpop.f32.mrb[21].mxu0 }
 0x98a   : > { %v2105_v18 = vadd.f32 %v2104_v17, %v2103_v14  ;;  %v2126_v19 = vpop.f32.mrb[21].mxu1  ;;  %v2106_v0 = vpop.f32.mrb[22].mxu0 }
 0x98b   : > { %v2127_v20 = vadd.f32 %v2126_v19, %v2125_v15  ;;  %v2128_v21 = vpop.f32.mrb[22].mxu1  ;;  %v2107_v22 = vpop.f32.mrb[23].mxu0 }
 0x98c   : > { %v1809_v23 = vadd.f32 %v2105_v18, %v2032_v31  ;;  %v2129_v24 = vpop.f32.mrb[23].mxu1 }
 0x98e   : > { %v1849_v25 = vadd.f32 %v2127_v20, %v1809_v23 }
 0x990   : > { %v1854_v26 = vadd.f32 %v1849_v25, %v2845_v16 }
 0x992   : > { %1855 = vst [vmem:[%s446_s23] sm:$0xff] %v1854_v26 }
 0x993   : > { %2432 = shalt.err (!%p2429_p7)
}
 0x994   : > { %s2433_s30 = scalar_lea.hbm %s2967_s17, 128  ;;  %s2437_s23 = scalar_lea.hbm %s3022_s13, 256 }
 0x995   : > { %p2434_p8 = scmp.ne.s32.totalorder %s2967_s17, %s2433_s30  ;;  %p2438_p1 = scmp.lt.u32.totalorder %s2967_s17, %s3022_s13 }
 0x996   : > { %p2439_p0 = scmp.lt.u32.totalorder %s2437_s23, %s2433_s30  ;;  %p2441_p6 = scmp.lt.u32.totalorder %s2433_s30, %s2967_s17 }
 0x997   : > { %p2435_p11 = pnand %p2434_p8, %p3041_p9 }
 0x998   : > { %p2440_p5 = por %p2439_p0, %p2438_p1 }
 0x999   : > { %p2436_p13 = pneg %p2435_p11 }
 0x99a   : > { %p2442_p10 = por %p2441_p6, %p2440_p5 }
 0x99c   : > { %p2443_p12 = pnand %p2442_p10, %p2436_p13 }
 0x99e   : > { %2446 = shalt.err (!%p2443_p12)
}
 0x99f   : > { %2183 = dma.vmem_to_hbm [thread:$0]  (%p3041_p9), %s2969_s21, 128, %s2967_s17, %s1857_s24  }
 0x9a0 PF: > { %p2195_p2 = scmp.ge.s32.totalorder %s2485_s28, 2  ;;  %s1882_s11 = sand.u32 1, %s2473_s25  }
 0x9a1   : > { %p3042_p3 = scmp.ne.s32.totalorder %s3034_s19, 0  ;;  %s1883_s29 = scalar_lea.sflag [#allocation4], %s1882_s11 }
 0x9a3   : > { %p2190_p4 = pnand %p2195_p2, %p3042_p3 }
 0x9a5   : > { %2468 = dma.done.wait (!%p2190_p4), %s1883_s29, 128  }
 0x9a6   : > { %2470 = vsyncadd (!%p2190_p4), %s1883_s29, 4294967168  ;;  %s3043_s28 = sld [smem:[#allocation9_spill]]  ;;  %s3044_s16 = sld [smem:[#allocation8_spill]] }
 0x9a7   : > { %s3045_s27 = sld [smem:[#allocation10_spill]]  ;;  %s3046_s25 = smov %s2477_s26 }
 0x9ac   : > { %p24_p7 = scmp.ge.s32.totalorder %s3043_s28, 4   ;;  %s3047_s26 = smov %s3044_s16 }
 0x9ae   :  { %26 = sbr.rel (!%p24_p7) target bundleno = 6 (0x6), region = 112 }
 0x9b5   :  { %1888 = vsyncpa [#allocation3], 1 }
 0x9b6   :  { %1890 = vsyncpa [#allocation3 + $0x1], 1 }
 0x9b7   :  { %1891 = vsyncpa [#allocation4], 1 }
 0x9b8   :  { %1893 = vsyncpa [#allocation4 + $0x1], 1 }

</bundles_post_ra>
